<compile_context>
chip_gen: v7x
topology: tpu7x:2x2x1
jax: 0.10.0
libtpu: 0.0.40
codegen_flags: <defaults>
</compile_context>

<pallas_src>
import math

import jax
import jax.numpy as jnp
from jax.experimental import pallas as pl
from jax.experimental.pallas import tpu as pltpu


def _round_up(x, m):
    return ((x + m - 1) // m) * m


# ----------------------------------------------------------------------------
# Kernel factory: fused MLP over one row-tile.
#   refs = [x, w0, b0, w1, b1, ..., w_{nh-1}, b_{nh-1}, w_last_row, out]
#   Hidden layers: Linear -> LeakyReLU(0.2) (Dropout = identity in eval mode).
#   Final Linear(dim -> 1): elementwise mul + lane reduction (XLU), written as
#   a (tile_r, 1) column (4 B/row of HBM traffic).  Final bias is added in the
#   wrapper.
# ----------------------------------------------------------------------------
def _make_kernel(num_hidden, mm_dtype):
    def kernel(*refs):
        x_ref = refs[0]
        out_ref = refs[-1]
        wb = refs[1:-1]

        h = x_ref[...]                                   # (tile_r, pacdim_p) f32
        for l in range(num_hidden):
            w = wb[2 * l][...]                           # (din_p, dout_p), pre-cast in wrapper
            b = wb[2 * l + 1][...]                       # (1, dout_p) f32
            h = jnp.dot(h.astype(mm_dtype), w,
                        preferred_element_type=jnp.float32) + b
            h = jnp.maximum(h, 0.2 * h)                  # LeakyReLU(0.2) on the VPU

        w_last = wb[2 * num_hidden][...].astype(jnp.float32)   # (1, d_last_p)
        score = jnp.sum(h * w_last, axis=-1, keepdims=True)    # (tile_r, 1)
        out_ref[...] = score.astype(out_ref.dtype)

    return kernel


# ----------------------------------------------------------------------------
# Generation-aware VMEM budget / tile cap / vmem_limit_bytes.
# ----------------------------------------------------------------------------
def _hw_config():
    vmem_cap = 64 << 20
    try:
        vmem_cap = int(pltpu.get_tpu_info().vmem_capacity_bytes)
    except Exception:
        pass
    if vmem_cap >= (100 << 20):          # v5e / v6e: 128 MiB physical VMEM
        return 88 << 20, 2048, 100 << 20
    return 36 << 20, 1024, 48 << 20      # v7x: 64 MiB physical VMEM


# ----------------------------------------------------------------------------
# Row-tile selection: biggest multiple-of-8 tile (<= cap) whose footprint fits
# the VMEM budget; also capped so the grid has >=4 steps when rows allow
# (shards across v7x's 2 TensorCores and enables input/output pipelining).
# Weights are counted double-buffered (conservative even if Buffered(1) lands).
# ----------------------------------------------------------------------------
def _choose_tile_r(rows, pacdim_p, widths_p, weight_bytes, budget, tile_cap):
    max_w = max([pacdim_p] + list(widths_p)) if widths_p else pacdim_p
    tile = min(tile_cap, _round_up(max(rows, 1), 8))
    if rows >= 32:
        tile = min(tile, max(8, _round_up(-(-rows // 4), 8)))
    while True:
        x_bytes = 2 * tile * pacdim_p * 4          # double-buffered input tile
        out_bytes = 2 * tile * 128 * 4             # output block (lane-padded in VMEM)
        act_bytes = 3 * tile * max_w * 4           # live activations (rough upper bound)
        if 2 * weight_bytes + x_bytes + out_bytes + act_bytes <= budget or tile <= 8:
            break
        tile = max(8, _round_up(tile // 2, 8))
    return tile


def discriminator_forward(x, params, pac, *, tile_r=None, use_bf16=False):
    """x: (B, input_dim) float32; params: dict of (in,out) weights / (1,out) biases."""
    B, input_dim = x.shape
    assert B % pac == 0
    pacdim = input_dim * pac
    rows = B // pac

    num_layers = len(params) // 2
    num_hidden = num_layers - 1
    hidden_dims = [params[f"w{l}"].shape[1] for l in range(num_hidden)]
    d_last = params[f"w{num_hidden}"].shape[0]

    # --- zero-pad feature widths to lane multiples (numerically exact) -------
    pacdim_p = _round_up(pacdim, 128)
    hidden_p = [_round_up(d, 128) for d in hidden_dims]
    d_last_p = _round_up(d_last, 128)

    def pad2(a, r, c):
        pr, pc = r - a.shape[0], c - a.shape[1]
        return jnp.pad(a, ((0, pr), (0, pc))) if (pr or pc) else a

    w_dtype = jnp.bfloat16 if use_bf16 else jnp.float32   # weights pre-cast once here
    ws, bs = [], []
    din_p = pacdim_p
    for l in range(num_hidden):
        ws.append(pad2(params[f"w{l}"], din_p, hidden_p[l]).astype(w_dtype))
        bs.append(pad2(params[f"b{l}"], 1, hidden_p[l]).astype(jnp.float32))
        din_p = hidden_p[l]
    w_last_row = pad2(params[f"w{num_hidden}"].reshape(1, d_last), 1, d_last_p)
    b_last = params[f"b{num_hidden}"].reshape(1, 1).astype(jnp.float32)

    # --- "pac" packing + column / row padding of the input -------------------
    x_packed = x.reshape(rows, pacdim)
    if pacdim_p != pacdim:
        x_packed = jnp.pad(x_packed, ((0, 0), (0, pacdim_p - pacdim)))

    weight_bytes = sum(int(a.size) * a.dtype.itemsize
                       for a in ws + bs + [w_last_row])

    budget, tile_cap, vmem_limit = _hw_config()
    if tile_r is None:
        tile_r = _choose_tile_r(rows, pacdim_p, hidden_p + [d_last_p],
                                weight_bytes, budget, tile_cap)
    rows_padded = _round_up(rows, tile_r)
    if rows_padded != rows:
        x_packed = jnp.pad(x_packed, ((0, rows_padded - rows), (0, 0)))

    grid = (rows_padded // tile_r,)
    kernel = _make_kernel(num_hidden, jnp.bfloat16 if use_bf16 else jnp.float32)

    # Advisory cost estimate for XLA's scheduler (honest output bytes now).
    flops = 0
    dp = pacdim_p
    for d in hidden_p + [d_last_p]:
        flops += 2 * rows_padded * dp * d
        dp = d
    cost = pl.CostEstimate(
        flops=flops, transcendentals=0,
        bytes_accessed=int(x_packed.size) * 4 + weight_bytes + rows_padded * 4)

    def run(single_buffer_weights):
        def const_spec(shape):
            if single_buffer_weights:
                return pl.BlockSpec(shape, lambda i: (0, 0),
                                    pipeline_mode=pl.Buffered(1))
            return pl.BlockSpec(shape, lambda i: (0, 0))

        operands = [x_packed]
        in_specs = [pl.BlockSpec((tile_r, pacdim_p), lambda i: (i, 0))]
        dp2 = pacdim_p
        for l in range(num_hidden):
            operands += [ws[l], bs[l]]
            in_specs += [const_spec((dp2, hidden_p[l])),
                         const_spec((1, hidden_p[l]))]
            dp2 = hidden_p[l]
        operands.append(w_last_row)
        in_specs.append(const_spec((1, d_last_p)))

        return pl.pallas_call(
            kernel,
            out_shape=jax.ShapeDtypeStruct((rows_padded, 1), jnp.float32),
            grid=grid,
            in_specs=in_specs,
            out_specs=pl.BlockSpec((tile_r, 1), lambda i: (i, 0)),
            compiler_params=pltpu.CompilerParams(
                dimension_semantics=("parallel",),   # row axis: megacore-shardable
                vmem_limit_bytes=vmem_limit),
            cost_estimate=cost,
        )(*operands)

    try:
        out_padded = run(True)       # weights single-buffered (fetched once, resident)
    except Exception:
        out_padded = run(False)      # fallback if pipeline_mode / Buffered(1) unsupported

    # Final bias applied in the wrapper (avoids a (1,1) VMEM operand).
    return out_padded[:rows] + b_last


# ----------------------------------------------------------------------------
# Deterministic parameter init (mirrors torch.nn.Linear's U(-1/sqrt(in), 1/sqrt(in)))
# Weights stored as (in_features, out_features).
# ----------------------------------------------------------------------------
def init_params(key, input_dim, discriminator_dim, pac):
    dims_in, dims_out = [], []
    dim = input_dim * pac
    for item in discriminator_dim:
        dims_in.append(dim)
        dims_out.append(item)
        dim = item
    dims_in.append(dim)
    dims_out.append(1)

    params = {}
    keys = jax.random.split(key, 2 * len(dims_in))
    for i, (din, dout) in enumerate(zip(dims_in, dims_out)):
        bound = 1.0 / math.sqrt(din)
        params[f"w{i}"] = jax.random.uniform(
            keys[2 * i], (din, dout), jnp.float32, -bound, bound)
        params[f"b{i}"] = jax.random.uniform(
            keys[2 * i + 1], (1, dout), jnp.float32, -bound, bound)
    return params


if __name__ == "__main__":
    # Small shapes consistent with the module:
    #   input_dim=16, pac=4, batch=8 (divisible by pac), discriminator_dim=(32, 32)
    input_dim = 16
    pac = 4
    batch = 8
    discriminator_dim = (32, 32)

    key = jax.random.PRNGKey(0)
    kx, kp = jax.random.split(key)

    x = jax.random.normal(kx, (batch, input_dim), jnp.float32)
    params = init_params(kp, input_dim, discriminator_dim, pac)

    out = discriminator_forward(x, params, pac)
    out = jax.block_until_ready(out)
    assert out.shape == (batch // pac, 1), out.shape

    # Reference check in plain JAX (same eval-mode semantics: Dropout = identity).
    h = x.reshape(batch // pac, input_dim * pac)
    h = h @ params["w0"] + params["b0"]
    h = jnp.where(h > 0, h, 0.2 * h)
    h = h @ params["w1"] + params["b1"]
    h = jnp.where(h > 0, h, 0.2 * h)
    ref = h @ params["w2"] + params["b2"]

    # TPU matmuls (kernel MXU and the XLA reference) run bf16-pass precision by
    # default, so compare at a tolerance that absorbs that, not 1e-5.
    assert jnp.allclose(out, ref, atol=1e-2, rtol=1e-2), (
        float(jnp.max(jnp.abs(out - ref))))

    print("KERNEL_OK")
</pallas_src>

<mosaic_0001>
module attributes {stable_mosaic.version = 11 : i64} {
  func.func @kernel(%arg0: i32, %arg1: memref<8x128xf32, #tpu.memory_space<vmem>>, %arg2: memref<128x128xf32, #tpu.memory_space<vmem>>, %arg3: memref<1x128xf32, #tpu.memory_space<vmem>>, %arg4: memref<128x128xf32, #tpu.memory_space<vmem>>, %arg5: memref<1x128xf32, #tpu.memory_space<vmem>>, %arg6: memref<1x128xf32, #tpu.memory_space<vmem>>, %arg7: memref<8x1xf32, #tpu.memory_space<vmem>>) attributes {dimension_semantics = [#tpu.dimension_semantics<parallel>], iteration_bounds = array<i64: 1>, scalar_prefetch = 0 : i64, scratch_operands = 0 : i64, tpu.core_type = #tpu.core_type<tc>, window_params = [{transform_indices = @transform_0, window_bounds = array<i64: 8, 128>}, {pipeline_mode = #tpu.pipeline_mode<synchronous>, transform_indices = @transform_1, window_bounds = array<i64: 128, 128>}, {pipeline_mode = #tpu.pipeline_mode<synchronous>, transform_indices = @transform_2, window_bounds = array<i64: 1, 128>}, {pipeline_mode = #tpu.pipeline_mode<synchronous>, transform_indices = @transform_3, window_bounds = array<i64: 128, 128>}, {pipeline_mode = #tpu.pipeline_mode<synchronous>, transform_indices = @transform_4, window_bounds = array<i64: 1, 128>}, {pipeline_mode = #tpu.pipeline_mode<synchronous>, transform_indices = @transform_5, window_bounds = array<i64: 1, 128>}, {transform_indices = @transform_6, window_bounds = array<i64: 8, 1>}]} {
    %c0 = arith.constant 0 : index
    %c0_0 = arith.constant 0 : index
    %0 = vector.load %arg1[%c0, %c0_0] : memref<8x128xf32, #tpu.memory_space<vmem>>, vector<8x128xf32>
    %c0_1 = arith.constant 0 : index
    %c0_2 = arith.constant 0 : index
    %1 = vector.load %arg2[%c0_1, %c0_2] : memref<128x128xf32, #tpu.memory_space<vmem>>, vector<128x128xf32>
    %c0_3 = arith.constant 0 : index
    %c0_4 = arith.constant 0 : index
    %2 = vector.load %arg3[%c0_3, %c0_4] : memref<1x128xf32, #tpu.memory_space<vmem>>, vector<1x128xf32>
    %cst = arith.constant dense<0.000000e+00> : vector<8x128xf32>
    %3 = tpu.matmul %0, %1, %cst {dimension_numbers = #tpu.dot_dimension_numbers<[1], [0], [0], [1], [0, 0, 1, 1], [], []>} : vector<8x128xf32>, vector<128x128xf32>, vector<8x128xf32> -> vector<8x128xf32>
    %4 = vector.broadcast %2 : vector<1x128xf32> to vector<8x128xf32>
    %5 = arith.addf %3, %4 : vector<8x128xf32>
    %cst_5 = arith.constant 2.000000e-01 : f32
    %6 = vector.broadcast %cst_5 : f32 to vector<8x128xf32>
    %7 = arith.mulf %6, %5 : vector<8x128xf32>
    %8 = arith.maximumf %5, %7 : vector<8x128xf32>
    %c0_6 = arith.constant 0 : index
    %c0_7 = arith.constant 0 : index
    %9 = vector.load %arg4[%c0_6, %c0_7] : memref<128x128xf32, #tpu.memory_space<vmem>>, vector<128x128xf32>
    %c0_8 = arith.constant 0 : index
    %c0_9 = arith.constant 0 : index
    %10 = vector.load %arg5[%c0_8, %c0_9] : memref<1x128xf32, #tpu.memory_space<vmem>>, vector<1x128xf32>
    %cst_10 = arith.constant dense<0.000000e+00> : vector<8x128xf32>
    %11 = tpu.matmul %8, %9, %cst_10 {dimension_numbers = #tpu.dot_dimension_numbers<[1], [0], [0], [1], [0, 0, 1, 1], [], []>} : vector<8x128xf32>, vector<128x128xf32>, vector<8x128xf32> -> vector<8x128xf32>
    %12 = vector.broadcast %10 : vector<1x128xf32> to vector<8x128xf32>
    %13 = arith.addf %11, %12 : vector<8x128xf32>
    %cst_11 = arith.constant 2.000000e-01 : f32
    %14 = vector.broadcast %cst_11 : f32 to vector<8x128xf32>
    %15 = arith.mulf %14, %13 : vector<8x128xf32>
    %16 = arith.maximumf %13, %15 : vector<8x128xf32>
    %c0_12 = arith.constant 0 : index
    %c0_13 = arith.constant 0 : index
    %17 = vector.load %arg6[%c0_12, %c0_13] : memref<1x128xf32, #tpu.memory_space<vmem>>, vector<1x128xf32>
    %18 = vector.broadcast %17 : vector<1x128xf32> to vector<8x128xf32>
    %19 = arith.mulf %16, %18 : vector<8x128xf32>
    %cst_14 = arith.constant dense<0.000000e+00> : vector<8xf32>
    %20 = vector.multi_reduction <add>, %19, %cst_14 [1] : vector<8x128xf32> to vector<8xf32>
    %21 = vector.shape_cast %20 : vector<8xf32> to vector<8x1xf32>
    %c0_15 = arith.constant 0 : index
    %c0_16 = arith.constant 0 : index
    %22 = vector.load %arg7[%c0_15, %c0_16] : memref<8x1xf32, #tpu.memory_space<vmem>>, vector<8x1xf32>
    tpu.vector_store %arg7[%c0_15, %c0_16], %21 {strides = array<i32>} : memref<8x1xf32, #tpu.memory_space<vmem>>, vector<8x1xf32>,
    return
  }
  func.func @transform_0(%arg0: i32) -> (i32, i32) {
    %c0_i32 = arith.constant 0 : i32
    %c0_i32_0 = arith.constant 0 : i32
    return %arg0, %c0_i32 : i32, i32
  }
  func.func @transform_1(%arg0: i32) -> (i32, i32) {
    %c0_i32 = arith.constant 0 : i32
    %c0_i32_0 = arith.constant 0 : i32
    %c0_i32_1 = arith.constant 0 : i32
    return %c0_i32, %c0_i32_0 : i32, i32
  }
  func.func @transform_2(%arg0: i32) -> (i32, i32) {
    %c0_i32 = arith.constant 0 : i32
    %c0_i32_0 = arith.constant 0 : i32
    %c0_i32_1 = arith.constant 0 : i32
    return %c0_i32, %c0_i32_0 : i32, i32
  }
  func.func @transform_3(%arg0: i32) -> (i32, i32) {
    %c0_i32 = arith.constant 0 : i32
    %c0_i32_0 = arith.constant 0 : i32
    %c0_i32_1 = arith.constant 0 : i32
    return %c0_i32, %c0_i32_0 : i32, i32
  }
  func.func @transform_4(%arg0: i32) -> (i32, i32) {
    %c0_i32 = arith.constant 0 : i32
    %c0_i32_0 = arith.constant 0 : i32
    %c0_i32_1 = arith.constant 0 : i32
    return %c0_i32, %c0_i32_0 : i32, i32
  }
  func.func @transform_5(%arg0: i32) -> (i32, i32) {
    %c0_i32 = arith.constant 0 : i32
    %c0_i32_0 = arith.constant 0 : i32
    %c0_i32_1 = arith.constant 0 : i32
    return %c0_i32, %c0_i32_0 : i32, i32
  }
  func.func @transform_6(%arg0: i32) -> (i32, i32) {
    %c0_i32 = arith.constant 0 : i32
    %c0_i32_0 = arith.constant 0 : i32
    return %arg0, %c0_i32 : i32, i32
  }
}

module attributes {stable_mosaic.version = 11 : i64} {
  func.func @kernel(%arg0: i32, %arg1: memref<8x128xf32, #tpu.memory_space<vmem>>, %arg2: memref<128x128xf32, #tpu.memory_space<vmem>>, %arg3: memref<1x128xf32, #tpu.memory_space<vmem>>, %arg4: memref<128x128xf32, #tpu.memory_space<vmem>>, %arg5: memref<1x128xf32, #tpu.memory_space<vmem>>, %arg6: memref<1x128xf32, #tpu.memory_space<vmem>>, %arg7: memref<8x1xf32, #tpu.memory_space<vmem>>) attributes {dimension_semantics = [#tpu.dimension_semantics<parallel>], iteration_bounds = array<i64: 1>, scalar_prefetch = 0 : i64, scratch_operands = 0 : i64, tpu.core_type = #tpu.core_type<tc>, window_params = [{transform_indices = @transform_0, window_bounds = array<i64: 8, 128>}, {pipeline_mode = #tpu.pipeline_mode<synchronous>, transform_indices = @transform_1, window_bounds = array<i64: 128, 128>}, {pipeline_mode = #tpu.pipeline_mode<synchronous>, transform_indices = @transform_2, window_bounds = array<i64: 1, 128>}, {pipeline_mode = #tpu.pipeline_mode<synchronous>, transform_indices = @transform_3, window_bounds = array<i64: 128, 128>}, {pipeline_mode = #tpu.pipeline_mode<synchronous>, transform_indices = @transform_4, window_bounds = array<i64: 1, 128>}, {pipeline_mode = #tpu.pipeline_mode<synchronous>, transform_indices = @transform_5, window_bounds = array<i64: 1, 128>}, {transform_indices = @transform_6, window_bounds = array<i64: 8, 1>}]} {
    %c0 = arith.constant 0 : index
    %c0_0 = arith.constant 0 : index
    %0 = vector.load %arg1[%c0, %c0_0] : memref<8x128xf32, #tpu.memory_space<vmem>>, vector<8x128xf32>
    %c0_1 = arith.constant 0 : index
    %c0_2 = arith.constant 0 : index
    %1 = vector.load %arg2[%c0_1, %c0_2] : memref<128x128xf32, #tpu.memory_space<vmem>>, vector<128x128xf32>
    %c0_3 = arith.constant 0 : index
    %c0_4 = arith.constant 0 : index
    %2 = vector.load %arg3[%c0_3, %c0_4] : memref<1x128xf32, #tpu.memory_space<vmem>>, vector<1x128xf32>
    %cst = arith.constant dense<0.000000e+00> : vector<8x128xf32>
    %3 = tpu.matmul %0, %1, %cst {dimension_numbers = #tpu.dot_dimension_numbers<[1], [0], [0], [1], [0, 0, 1, 1], [], []>} : vector<8x128xf32>, vector<128x128xf32>, vector<8x128xf32> -> vector<8x128xf32>
    %4 = vector.broadcast %2 : vector<1x128xf32> to vector<8x128xf32>
    %5 = arith.addf %3, %4 : vector<8x128xf32>
    %cst_5 = arith.constant 2.000000e-01 : f32
    %6 = vector.broadcast %cst_5 : f32 to vector<8x128xf32>
    %7 = arith.mulf %6, %5 : vector<8x128xf32>
    %8 = arith.maximumf %5, %7 : vector<8x128xf32>
    %c0_6 = arith.constant 0 : index
    %c0_7 = arith.constant 0 : index
    %9 = vector.load %arg4[%c0_6, %c0_7] : memref<128x128xf32, #tpu.memory_space<vmem>>, vector<128x128xf32>
    %c0_8 = arith.constant 0 : index
    %c0_9 = arith.constant 0 : index
    %10 = vector.load %arg5[%c0_8, %c0_9] : memref<1x128xf32, #tpu.memory_space<vmem>>, vector<1x128xf32>
    %cst_10 = arith.constant dense<0.000000e+00> : vector<8x128xf32>
    %11 = tpu.matmul %8, %9, %cst_10 {dimension_numbers = #tpu.dot_dimension_numbers<[1], [0], [0], [1], [0, 0, 1, 1], [], []>} : vector<8x128xf32>, vector<128x128xf32>, vector<8x128xf32> -> vector<8x128xf32>
    %12 = vector.broadcast %10 : vector<1x128xf32> to vector<8x128xf32>
    %13 = arith.addf %11, %12 : vector<8x128xf32>
    %cst_11 = arith.constant 2.000000e-01 : f32
    %14 = vector.broadcast %cst_11 : f32 to vector<8x128xf32>
    %15 = arith.mulf %14, %13 : vector<8x128xf32>
    %16 = arith.maximumf %13, %15 : vector<8x128xf32>
    %c0_12 = arith.constant 0 : index
    %c0_13 = arith.constant 0 : index
    %17 = vector.load %arg6[%c0_12, %c0_13] : memref<1x128xf32, #tpu.memory_space<vmem>>, vector<1x128xf32>
    %18 = vector.broadcast %17 : vector<1x128xf32> to vector<8x128xf32>
    %19 = arith.mulf %16, %18 : vector<8x128xf32>
    %cst_14 = arith.constant dense<0.000000e+00> : vector<8xf32>
    %20 = vector.multi_reduction <add>, %19, %cst_14 [1] : vector<8x128xf32> to vector<8xf32>
    %21 = vector.shape_cast %20 : vector<8xf32> to vector<8x1xf32>
    %c0_15 = arith.constant 0 : index
    %c0_16 = arith.constant 0 : index
    %22 = vector.load %arg7[%c0_15, %c0_16] : memref<8x1xf32, #tpu.memory_space<vmem>>, vector<8x1xf32>
    tpu.vector_store %arg7[%c0_15, %c0_16], %21 {strides = array<i32>} : memref<8x1xf32, #tpu.memory_space<vmem>>, vector<8x1xf32>,
    return
  }
  func.func @transform_0(%arg0: i32) -> (i32, i32) {
    %c0_i32 = arith.constant 0 : i32
    %c0_i32_0 = arith.constant 0 : i32
    return %arg0, %c0_i32 : i32, i32
  }
  func.func @transform_1(%arg0: i32) -> (i32, i32) {
    %c0_i32 = arith.constant 0 : i32
    %c0_i32_0 = arith.constant 0 : i32
    %c0_i32_1 = arith.constant 0 : i32
    return %c0_i32, %c0_i32_0 : i32, i32
  }
  func.func @transform_2(%arg0: i32) -> (i32, i32) {
    %c0_i32 = arith.constant 0 : i32
    %c0_i32_0 = arith.constant 0 : i32
    %c0_i32_1 = arith.constant 0 : i32
    return %c0_i32, %c0_i32_0 : i32, i32
  }
  func.func @transform_3(%arg0: i32) -> (i32, i32) {
    %c0_i32 = arith.constant 0 : i32
    %c0_i32_0 = arith.constant 0 : i32
    %c0_i32_1 = arith.constant 0 : i32
    return %c0_i32, %c0_i32_0 : i32, i32
  }
  func.func @transform_4(%arg0: i32) -> (i32, i32) {
    %c0_i32 = arith.constant 0 : i32
    %c0_i32_0 = arith.constant 0 : i32
    %c0_i32_1 = arith.constant 0 : i32
    return %c0_i32, %c0_i32_0 : i32, i32
  }
  func.func @transform_5(%arg0: i32) -> (i32, i32) {
    %c0_i32 = arith.constant 0 : i32
    %c0_i32_0 = arith.constant 0 : i32
    %c0_i32_1 = arith.constant 0 : i32
    return %c0_i32, %c0_i32_0 : i32, i32
  }
  func.func @transform_6(%arg0: i32) -> (i32, i32) {
    %c0_i32 = arith.constant 0 : i32
    %c0_i32_0 = arith.constant 0 : i32
    return %arg0, %c0_i32 : i32, i32
  }
}

</mosaic_0001>

<bundles_post_ra>
// kernel: tpu_custom_call.1
= control target key start
LH: loop header
LB: loop body
LE: loop exit
PB: predicated region body
PF: predicated region fallthrough
CT: control target
= control target key end

     0   :  { %11 = vsyncpa [#allocation3], 0  ;;  %s617_s0 = inlined_call_operand.hbm [shape: f32[8,128], index: 0, kind: input, shape index: {}]   ;;  %s618_s1 = inlined_call_operand.hbm [shape: f32[128,128], index: 1, kind: input, shape index: {}]   ;;  %s619_s2 = inlined_call_operand.vmem [shape: f32[1,128], index: 2, kind: input, shape index: {}]   ;;  %s620_s3 = inlined_call_operand.hbm [shape: f32[128,128], index: 3, kind: input, shape index: {}]   ;;  %s621_s4 = inlined_call_operand.vmem [shape: f32[1,128], index: 4, kind: input, shape index: {}]   ;;  %s622_s5 = inlined_call_operand.vmem [shape: f32[1,128], index: 5, kind: input, shape index: {}]   ;;  %s623_s6 = inlined_call_operand.vmem [shape: f32[8,1], index: 6, kind: output, shape index: {}]  }
   0x1   :  { %12 = vsyncpa [#allocation5], 0  ;;  %s504_s21 = smov [#allocation4]   ;;  %s434_s25 = scalar_lea.hbm %s618_s1, 2048 }
   0x2   :  { %s28_s22 = sshll.u32 %s504_s21, 4  ;;  %p435_p0 = scmp.ne.s32.totalorder %s618_s1, %s434_s25  ;;  %s29_s22 = int_to_ptr.vmem [resolvable:$true] %s28_s22 }
   0x3   :  { %p438_p1 = scmp.lt.u32.totalorder %s434_s25, %s618_s1 }
   0x5   :  { %p440_p2 = pnand %p438_p1, %p435_p0 }
   0x7   :  { %443 = shalt.err (!%p440_p2)
}
   0x8   :  { %s444_s30 = scalar_lea.vmem %s29_s22, 2048  ;;  %p449_p4 = scmp.lt.s32.totalorder %s29_s22, %s29_s22 }
   0x9   :  { %p445_p3 = scmp.ne.s32.totalorder %s29_s22, %s444_s30  ;;  %p450_p5 = scmp.lt.s32.totalorder %s444_s30, %s444_s30 }
   0xb   :  { %p451_p6 = por %p450_p5, %p449_p4 }
   0xd   :  { %p452_p7 = pnand %p451_p6, %p445_p3 }
   0xf   :  { %455 = shalt.err (!%p452_p7)
}
  0x10   :  { %s505_s7 = smov 128   ;;  %s506_s8 = smov 8  }
  0x11   :  { %34 = dma.hbm_to_vmem [thread:$0]  %s618_s1, 2048, %s29_s22, [#allocation5], %s505_s7, %s505_s7, %s506_s8  }
  0x12   :  { %s507_s11 = smov [#allocation2]   ;;  %s508_s13 = smov [#allocation6]  }
  0x13   :  { %s19_s12 = sshll.u32 %s507_s11, 4  ;;  %s42_s14 = sshll.u32 %s508_s13, 4  ;;  %s20_s12 = int_to_ptr.vmem [resolvable:$true] %s19_s12  ;;  %s43_s14 = int_to_ptr.vmem [resolvable:$true] %s42_s14 }
  0x14   :  { %s456_s17 = scalar_lea.hbm %s617_s0, 128 }
  0x15   :  { %p457_p8 = scmp.ne.s32.totalorder %s617_s0, %s456_s17  ;;  %p460_p9 = scmp.lt.u32.totalorder %s456_s17, %s617_s0 }
  0x17   :  { %p462_p10 = pnand %p460_p9, %p457_p8 }
  0x19   :  { %465 = shalt.err (!%p462_p10)
}
  0x1a   :  { %s466_s1 = scalar_lea.vmem %s20_s12, 128  ;;  %p471_p12 = scmp.lt.s32.totalorder %s20_s12, %s20_s12 }
  0x1b   :  { %p467_p11 = scmp.ne.s32.totalorder %s20_s12, %s466_s1  ;;  %p472_p13 = scmp.lt.s32.totalorder %s466_s1, %s466_s1 }
  0x1d   :  { %p473_p0 = por %p472_p13, %p471_p12 }
  0x1f   :  { %p474_p1 = pnand %p473_p0, %p467_p11 }
  0x21   :  { %477 = shalt.err (!%p474_p1)
}
  0x22   :  { %22 = dma.hbm_to_vmem [thread:$0]  %s617_s0, 128, %s20_s12, [#allocation3]  }
  0x23   :  { %s478_s26 = scalar_lea.hbm %s620_s3, 2048 }
  0x24   :  { %p479_p2 = scmp.ne.s32.totalorder %s620_s3, %s478_s26  ;;  %p482_p3 = scmp.lt.u32.totalorder %s478_s26, %s620_s3 }
  0x26   :  { %p484_p4 = pnand %p482_p3, %p479_p2 }
  0x28   :  { %487 = shalt.err (!%p484_p4)
}
  0x29   :  { %s488_s9 = scalar_lea.vmem %s43_s14, 2048  ;;  %p493_p6 = scmp.lt.s32.totalorder %s43_s14, %s43_s14 }
  0x2a   :  { %p489_p5 = scmp.ne.s32.totalorder %s43_s14, %s488_s9  ;;  %p494_p7 = scmp.lt.s32.totalorder %s488_s9, %s488_s9 }
  0x2c   :  { %p495_p8 = por %p494_p7, %p493_p6 }
  0x2e   :  { %p496_p9 = pnand %p495_p8, %p489_p5 }
  0x30   :  { %499 = shalt.err (!%p496_p9)
}
  0x31   :  { %48 = dma.hbm_to_vmem [thread:$0]  %s620_s3, 2048, %s43_s14, [#allocation5], %s505_s7, %s505_s7, %s506_s8  }
  0x32   :  { %500 = dma.done.wait [#allocation3], 128  }
  0x33   :  { %501 = vsyncadd [#allocation3], 4294967168 }
  0x34   :  { %502 = dma.done.wait [#allocation5], 4096  }
  0x35   :  { %503 = vsyncadd [#allocation5], 4294963200  ;;  %v509_v0 = vmov 0.0|0.0   ;;  %vm510_vm0 = vmmov 0   ;;  %v511_v1 = vmov 0.0   ;;  %v63_v2 = vld [vmem:[#allocation4] sm:$0xff] }
  0x36   :  { %378 = vmatprep.subr.bf16.mxu0 %v509_v0  ;;  %340 = vmatprep.mubr.msk.f32.mxu0 %vm510_vm0, %v511_v1  ;;  %v64_v3 = vld [vmem:[#allocation4 + $0x8] sm:$0xff]  ;;  %v65_v4 = vld [vmem:[#allocation4 + $0x10] sm:$0xff]  ;;  %v66_v6 = vld [vmem:[#allocation4 + $0x18] sm:$0xff]  ;;  %vm263_vm1 = vcmask 7168  }
  0x37   :  { %402 = vmatprep.subr.bf16.mxu1 %v509_v0  ;;  %375 = vmatprep.mubr.msk.f32.mxu1 %vm510_vm0, %v511_v1  ;;  %v379_v5 = vpack.c.bf16 %v64_v3, %v63_v2  ;;  %v382_v7 = vpack.c.bf16 %v66_v6, %v65_v4  ;;  %v67_v8 = vld [vmem:[#allocation4 + $0x20] sm:$0xff]  ;;  %v68_v9 = vld [vmem:[#allocation4 + $0x28] sm:$0xff]  ;;  %v160_v12 = vld [vmem:[#allocation6 + $0x10] sm:$0xff] }
  0x38   :  { %v158_v10 = vld [vmem:[#allocation6] sm:$0xff]  ;;  %v159_v11 = vld [vmem:[#allocation6 + $0x8] sm:$0xff]  ;;  %v161_v13 = vld [vmem:[#allocation6 + $0x18] sm:$0xff]  ;;  %v385_v14 = vpack.c.bf16 %v68_v9, %v67_v8 }
  0x39   :  { %380 = vmatpush3.bf16.msra.mxu0 %v379_v5  ;;  %v403_v15 = vpack.c.bf16 %v159_v11, %v158_v10  ;;  %v69_v16 = vld [vmem:[#allocation4 + $0x30] sm:$0xff]  ;;  %v70_v17 = vld [vmem:[#allocation4 + $0x38] sm:$0xff]  ;;  %v406_v18 = vpack.c.bf16 %v161_v13, %v160_v12  ;;  %v162_v19 = vld [vmem:[#allocation6 + $0x20] sm:$0xff] }
  0x3a   :  { %381 = vmatprep.subr.bf16.mxu0 %v509_v0  ;;  %v163_v20 = vld [vmem:[#allocation6 + $0x28] sm:$0xff]  ;;  %v388_v21 = vpack.c.bf16 %v70_v17, %v69_v16  ;;  %v71_v22 = vld [vmem:[#allocation4 + $0x40] sm:$0xff]  ;;  %v164_v25 = vld [vmem:[#allocation6 + $0x30] sm:$0xff] }
  0x3b   :  { %404 = vmatpush3.bf16.msra.mxu1 %v403_v15  ;;  %v72_v23 = vld [vmem:[#allocation4 + $0x48] sm:$0xff]  ;;  %v409_v24 = vpack.c.bf16 %v163_v20, %v162_v19  ;;  %v165_v26 = vld [vmem:[#allocation6 + $0x38] sm:$0xff]  ;;  %v73_v28 = vld [vmem:[#allocation4 + $0x50] sm:$0xff] }
  0x3c   :  { %405 = vmatprep.subr.bf16.mxu1 %v509_v0  ;;  %v391_v27 = vpack.c.bf16 %v72_v23, %v71_v22  ;;  %v74_v29 = vld [vmem:[#allocation4 + $0x58] sm:$0xff]  ;;  %v412_v30 = vpack.c.bf16 %v165_v26, %v164_v25  ;;  %v166_v31 = vld [vmem:[#allocation6 + $0x40] sm:$0xff]  ;;  %v167_v32 = vld [vmem:[#allocation6 + $0x48] sm:$0xff] }
  0x3d   :  { %383 = vmatpush3.bf16.msra.mxu0 %v382_v7  ;;  %v394_v33 = vpack.c.bf16 %v74_v29, %v73_v28  ;;  %v75_v34 = vld [vmem:[#allocation4 + $0x60] sm:$0xff]  ;;  %v76_v35 = vld [vmem:[#allocation4 + $0x68] sm:$0xff]  ;;  %v415_v36 = vpack.c.bf16 %v167_v32, %v166_v31  ;;  %v168_v37 = vld [vmem:[#allocation6 + $0x50] sm:$0xff] }
  0x3e   :  { %384 = vmatprep.subr.bf16.mxu0 %v509_v0  ;;  %v169_v38 = vld [vmem:[#allocation6 + $0x58] sm:$0xff]  ;;  %v397_v39 = vpack.c.bf16 %v76_v35, %v75_v34  ;;  %v77_v40 = vld [vmem:[#allocation4 + $0x70] sm:$0xff]  ;;  %v170_v45 = vld [vmem:[#allocation6 + $0x60] sm:$0xff] }
  0x3f   :  { %407 = vmatpush3.bf16.msra.mxu1 %v406_v18  ;;  %v78_v41 = vld [vmem:[#allocation4 + $0x78] sm:$0xff]  ;;  %v418_v42 = vpack.c.bf16 %v169_v38, %v168_v37  ;;  %v171_v46 = vld [vmem:[#allocation6 + $0x68] sm:$0xff]  ;;  %v172_v48 = vld [vmem:[#allocation6 + $0x70] sm:$0xff] }
  0x40   :  { %408 = vmatprep.subr.bf16.mxu1 %v509_v0  ;;  %v400_v43 = vpack.c.bf16 %v78_v41, %v77_v40  ;;  %v62_v44 = vld [vmem:[#allocation2] sm:$0xff]  ;;  %v421_v47 = vpack.c.bf16 %v171_v46, %v170_v45 }
  0x41   :  { %386 = vmatpush3.bf16.msra.mxu0 %v385_v14  ;;  %v173_v49 = vld [vmem:[#allocation6 + $0x78] sm:$0xff] }
  0x42   :  { %387 = vmatprep.subr.bf16.mxu0 %v509_v0  ;;  %v424_v50 = vpack.c.bf16 %v173_v49, %v172_v48  ;;  %v271_v51 = vld [vmem:[%s619_s2] ss:$0 sm:$0xff] }
  0x43   :  { %410 = vmatpush3.bf16.msra.mxu1 %v409_v24  ;;  %v272_v57 = vld [vmem:[%s621_s4] ss:$0 sm:$0xff] }
  0x44   :  { %411 = vmatprep.subr.bf16.mxu1 %v509_v0  ;;  %v273_v62 = vld [vmem:[%s622_s5] ss:$0 sm:$0xff] }
  0x45   :  { %389 = vmatpush3.bf16.msra.mxu0 %v388_v21 }
  0x46   :  { %390 = vmatprep.subr.bf16.mxu0 %v509_v0 }
  0x47   :  { %413 = vmatpush3.bf16.msra.mxu1 %v412_v30 }
  0x48   :  { %414 = vmatprep.subr.bf16.mxu1 %v509_v0 }
  0x49   :  { %392 = vmatpush3.bf16.msra.mxu0 %v391_v27 }
  0x4a   :  { %393 = vmatprep.subr.bf16.mxu0 %v509_v0 }
  0x4b   :  { %416 = vmatpush3.bf16.msra.mxu1 %v415_v36 }
  0x4c   :  { %417 = vmatprep.subr.bf16.mxu1 %v509_v0 }
  0x4d   :  { %395 = vmatpush3.bf16.msra.mxu0 %v394_v33 }
  0x4e   :  { %396 = vmatprep.subr.bf16.mxu0 %v509_v0 }
  0x4f   :  { %419 = vmatpush3.bf16.msra.mxu1 %v418_v42 }
  0x50   :  { %420 = vmatprep.subr.bf16.mxu1 %v509_v0 }
  0x51   :  { %398 = vmatpush3.bf16.msra.mxu0 %v397_v39 }
  0x52   :  { %399 = vmatprep.subr.bf16.mxu0 %v509_v0 }
  0x53   :  { %422 = vmatpush3.bf16.msra.mxu1 %v421_v47 }
  0x54   :  { %423 = vmatprep.subr.bf16.mxu1 %v509_v0 }
  0x55   :  { %401 = vmatpush3.bf16.msra.mxu0 %v400_v43 }
  0x57   :  { %425 = vmatpush3.bf16.msra.mxu1 %v424_v50 }
  0x58   :  { %341 = vmatmul.mubr.f32.vlgmr.msra.gmra.mrb[0].mxu0 %v62_v44 }
 0x12b   :  { %v152_v52 = vpop.f32.mrb[0].mxu0 }
 0x12c   :  { %v153_v53 = vadd.f32 %v271_v51, %v152_v52  ;;  %v342_v54 = vpop.f32.mrb[1].mxu0 }
 0x12e   :  { %v156_v55 = vmul.f32 0.2, %v153_v53 }
 0x130   :  { %v157_v56 = vmax.f32 %v153_v53, %v156_v55 }
 0x132   :  { %376 = vmatmul.mubr.f32.vlgmr.msra.gmra.mrb[0].mxu1 %v157_v56 }
 0x205   :  { %v247_v58 = vpop.f32.mrb[0].mxu1 }
 0x206   :  { %v248_v59 = vadd.f32 %v272_v57, %v247_v58  ;;  %v377_v60 = vpop.f32.mrb[1].mxu1 }
 0x208   :  { %v251_v61 = vmul.f32 0.2, %v248_v59 }
 0x20a   :  { %v252_v63 = vmax.f32 %v248_v59, %v251_v61 }
 0x20c   :  { %v260_v0 = vmul.f32 %v273_v62, %v252_v63 }
 0x20e   :  { %261 = vadd.xlane.f32.xlu0 %v260_v0 }
 0x29b   :  { %v262_v1 = vpop.xlane.xlu0 %261 }
 0x29c   :  { %264 = vst.msk [vmem:[%s623_s6] sm:$0xff] %vm263_vm1, %v262_v1 }
 0x29d   :  { %269 = vsyncpa [#allocation3], 1 }
 0x29e   :  { %270 = vsyncpa [#allocation5], 1 }

// kernel: tpu_custom_call.1
= control target key start
LH: loop header
LB: loop body
LE: loop exit
PB: predicated region body
PF: predicated region fallthrough
CT: control target
= control target key end

     0   :  { %11 = vsyncpa [#allocation3], 0  ;;  %s617_s0 = inlined_call_operand.hbm [shape: f32[8,128], index: 0, kind: input, shape index: {}]   ;;  %s618_s1 = inlined_call_operand.hbm [shape: f32[128,128], index: 1, kind: input, shape index: {}]   ;;  %s619_s2 = inlined_call_operand.vmem [shape: f32[1,128], index: 2, kind: input, shape index: {}]   ;;  %s620_s3 = inlined_call_operand.hbm [shape: f32[128,128], index: 3, kind: input, shape index: {}]   ;;  %s621_s4 = inlined_call_operand.vmem [shape: f32[1,128], index: 4, kind: input, shape index: {}]   ;;  %s622_s5 = inlined_call_operand.vmem [shape: f32[1,128], index: 5, kind: input, shape index: {}]   ;;  %s623_s6 = inlined_call_operand.vmem [shape: f32[8,1], index: 6, kind: output, shape index: {}]  }
   0x1   :  { %12 = vsyncpa [#allocation5], 0  ;;  %s504_s21 = smov [#allocation4]   ;;  %s434_s25 = scalar_lea.hbm %s618_s1, 2048 }
   0x2   :  { %s28_s22 = sshll.u32 %s504_s21, 4  ;;  %p435_p0 = scmp.ne.s32.totalorder %s618_s1, %s434_s25  ;;  %s29_s22 = int_to_ptr.vmem [resolvable:$true] %s28_s22 }
   0x3   :  { %p438_p1 = scmp.lt.u32.totalorder %s434_s25, %s618_s1 }
   0x5   :  { %p440_p2 = pnand %p438_p1, %p435_p0 }
   0x7   :  { %443 = shalt.err (!%p440_p2)
}
   0x8   :  { %s444_s30 = scalar_lea.vmem %s29_s22, 2048  ;;  %p449_p4 = scmp.lt.s32.totalorder %s29_s22, %s29_s22 }
   0x9   :  { %p445_p3 = scmp.ne.s32.totalorder %s29_s22, %s444_s30  ;;  %p450_p5 = scmp.lt.s32.totalorder %s444_s30, %s444_s30 }
   0xb   :  { %p451_p6 = por %p450_p5, %p449_p4 }
   0xd   :  { %p452_p7 = pnand %p451_p6, %p445_p3 }
   0xf   :  { %455 = shalt.err (!%p452_p7)
}
  0x10   :  { %s505_s7 = smov 128   ;;  %s506_s8 = smov 8  }
  0x11   :  { %34 = dma.hbm_to_vmem [thread:$0]  %s618_s1, 2048, %s29_s22, [#allocation5], %s505_s7, %s505_s7, %s506_s8  }
  0x12   :  { %s507_s11 = smov [#allocation2]   ;;  %s508_s13 = smov [#allocation6]  }
  0x13   :  { %s19_s12 = sshll.u32 %s507_s11, 4  ;;  %s42_s14 = sshll.u32 %s508_s13, 4  ;;  %s20_s12 = int_to_ptr.vmem [resolvable:$true] %s19_s12  ;;  %s43_s14 = int_to_ptr.vmem [resolvable:$true] %s42_s14 }
  0x14   :  { %s456_s17 = scalar_lea.hbm %s617_s0, 128 }
  0x15   :  { %p457_p8 = scmp.ne.s32.totalorder %s617_s0, %s456_s17  ;;  %p460_p9 = scmp.lt.u32.totalorder %s456_s17, %s617_s0 }
  0x17   :  { %p462_p10 = pnand %p460_p9, %p457_p8 }
  0x19   :  { %465 = shalt.err (!%p462_p10)
}
  0x1a   :  { %s466_s1 = scalar_lea.vmem %s20_s12, 128  ;;  %p471_p12 = scmp.lt.s32.totalorder %s20_s12, %s20_s12 }
  0x1b   :  { %p467_p11 = scmp.ne.s32.totalorder %s20_s12, %s466_s1  ;;  %p472_p13 = scmp.lt.s32.totalorder %s466_s1, %s466_s1 }
  0x1d   :  { %p473_p0 = por %p472_p13, %p471_p12 }
  0x1f   :  { %p474_p1 = pnand %p473_p0, %p467_p11 }
  0x21   :  { %477 = shalt.err (!%p474_p1)
}
  0x22   :  { %22 = dma.hbm_to_vmem [thread:$0]  %s617_s0, 128, %s20_s12, [#allocation3]  }
  0x23   :  { %s478_s26 = scalar_lea.hbm %s620_s3, 2048 }
  0x24   :  { %p479_p2 = scmp.ne.s32.totalorder %s620_s3, %s478_s26  ;;  %p482_p3 = scmp.lt.u32.totalorder %s478_s26, %s620_s3 }
  0x26   :  { %p484_p4 = pnand %p482_p3, %p479_p2 }
  0x28   :  { %487 = shalt.err (!%p484_p4)
}
  0x29   :  { %s488_s9 = scalar_lea.vmem %s43_s14, 2048  ;;  %p493_p6 = scmp.lt.s32.totalorder %s43_s14, %s43_s14 }
  0x2a   :  { %p489_p5 = scmp.ne.s32.totalorder %s43_s14, %s488_s9  ;;  %p494_p7 = scmp.lt.s32.totalorder %s488_s9, %s488_s9 }
  0x2c   :  { %p495_p8 = por %p494_p7, %p493_p6 }
  0x2e   :  { %p496_p9 = pnand %p495_p8, %p489_p5 }
  0x30   :  { %499 = shalt.err (!%p496_p9)
}
  0x31   :  { %48 = dma.hbm_to_vmem [thread:$0]  %s620_s3, 2048, %s43_s14, [#allocation5], %s505_s7, %s505_s7, %s506_s8  }
  0x32   :  { %500 = dma.done.wait [#allocation3], 128  }
  0x33   :  { %501 = vsyncadd [#allocation3], 4294967168 }
  0x34   :  { %502 = dma.done.wait [#allocation5], 4096  }
  0x35   :  { %503 = vsyncadd [#allocation5], 4294963200  ;;  %v509_v0 = vmov 0.0|0.0   ;;  %vm510_vm0 = vmmov 0   ;;  %v511_v1 = vmov 0.0   ;;  %v63_v2 = vld [vmem:[#allocation4] sm:$0xff] }
  0x36   :  { %378 = vmatprep.subr.bf16.mxu0 %v509_v0  ;;  %340 = vmatprep.mubr.msk.f32.mxu0 %vm510_vm0, %v511_v1  ;;  %v64_v3 = vld [vmem:[#allocation4 + $0x8] sm:$0xff]  ;;  %v65_v4 = vld [vmem:[#allocation4 + $0x10] sm:$0xff]  ;;  %v66_v6 = vld [vmem:[#allocation4 + $0x18] sm:$0xff]  ;;  %vm263_vm1 = vcmask 7168  }
  0x37   :  { %402 = vmatprep.subr.bf16.mxu1 %v509_v0  ;;  %375 = vmatprep.mubr.msk.f32.mxu1 %vm510_vm0, %v511_v1  ;;  %v379_v5 = vpack.c.bf16 %v64_v3, %v63_v2  ;;  %v382_v7 = vpack.c.bf16 %v66_v6, %v65_v4  ;;  %v67_v8 = vld [vmem:[#allocation4 + $0x20] sm:$0xff]  ;;  %v68_v9 = vld [vmem:[#allocation4 + $0x28] sm:$0xff]  ;;  %v160_v12 = vld [vmem:[#allocation6 + $0x10] sm:$0xff] }
  0x38   :  { %v158_v10 = vld [vmem:[#allocation6] sm:$0xff]  ;;  %v159_v11 = vld [vmem:[#allocation6 + $0x8] sm:$0xff]  ;;  %v161_v13 = vld [vmem:[#allocation6 + $0x18] sm:$0xff]  ;;  %v385_v14 = vpack.c.bf16 %v68_v9, %v67_v8 }
  0x39   :  { %380 = vmatpush3.bf16.msra.mxu0 %v379_v5  ;;  %v403_v15 = vpack.c.bf16 %v159_v11, %v158_v10  ;;  %v69_v16 = vld [vmem:[#allocation4 + $0x30] sm:$0xff]  ;;  %v70_v17 = vld [vmem:[#allocation4 + $0x38] sm:$0xff]  ;;  %v406_v18 = vpack.c.bf16 %v161_v13, %v160_v12  ;;  %v162_v19 = vld [vmem:[#allocation6 + $0x20] sm:$0xff] }
  0x3a   :  { %381 = vmatprep.subr.bf16.mxu0 %v509_v0  ;;  %v163_v20 = vld [vmem:[#allocation6 + $0x28] sm:$0xff]  ;;  %v388_v21 = vpack.c.bf16 %v70_v17, %v69_v16  ;;  %v71_v22 = vld [vmem:[#allocation4 + $0x40] sm:$0xff]  ;;  %v164_v25 = vld [vmem:[#allocation6 + $0x30] sm:$0xff] }
  0x3b   :  { %404 = vmatpush3.bf16.msra.mxu1 %v403_v15  ;;  %v72_v23 = vld [vmem:[#allocation4 + $0x48] sm:$0xff]  ;;  %v409_v24 = vpack.c.bf16 %v163_v20, %v162_v19  ;;  %v165_v26 = vld [vmem:[#allocation6 + $0x38] sm:$0xff]  ;;  %v73_v28 = vld [vmem:[#allocation4 + $0x50] sm:$0xff] }
  0x3c   :  { %405 = vmatprep.subr.bf16.mxu1 %v509_v0  ;;  %v391_v27 = vpack.c.bf16 %v72_v23, %v71_v22  ;;  %v74_v29 = vld [vmem:[#allocation4 + $0x58] sm:$0xff]  ;;  %v412_v30 = vpack.c.bf16 %v165_v26, %v164_v25  ;;  %v166_v31 = vld [vmem:[#allocation6 + $0x40] sm:$0xff]  ;;  %v167_v32 = vld [vmem:[#allocation6 + $0x48] sm:$0xff] }
  0x3d   :  { %383 = vmatpush3.bf16.msra.mxu0 %v382_v7  ;;  %v394_v33 = vpack.c.bf16 %v74_v29, %v73_v28  ;;  %v75_v34 = vld [vmem:[#allocation4 + $0x60] sm:$0xff]  ;;  %v76_v35 = vld [vmem:[#allocation4 + $0x68] sm:$0xff]  ;;  %v415_v36 = vpack.c.bf16 %v167_v32, %v166_v31  ;;  %v168_v37 = vld [vmem:[#allocation6 + $0x50] sm:$0xff] }
  0x3e   :  { %384 = vmatprep.subr.bf16.mxu0 %v509_v0  ;;  %v169_v38 = vld [vmem:[#allocation6 + $0x58] sm:$0xff]  ;;  %v397_v39 = vpack.c.bf16 %v76_v35, %v75_v34  ;;  %v77_v40 = vld [vmem:[#allocation4 + $0x70] sm:$0xff]  ;;  %v170_v45 = vld [vmem:[#allocation6 + $0x60] sm:$0xff] }
  0x3f   :  { %407 = vmatpush3.bf16.msra.mxu1 %v406_v18  ;;  %v78_v41 = vld [vmem:[#allocation4 + $0x78] sm:$0xff]  ;;  %v418_v42 = vpack.c.bf16 %v169_v38, %v168_v37  ;;  %v171_v46 = vld [vmem:[#allocation6 + $0x68] sm:$0xff]  ;;  %v172_v48 = vld [vmem:[#allocation6 + $0x70] sm:$0xff] }
  0x40   :  { %408 = vmatprep.subr.bf16.mxu1 %v509_v0  ;;  %v400_v43 = vpack.c.bf16 %v78_v41, %v77_v40  ;;  %v62_v44 = vld [vmem:[#allocation2] sm:$0xff]  ;;  %v421_v47 = vpack.c.bf16 %v171_v46, %v170_v45 }
  0x41   :  { %386 = vmatpush3.bf16.msra.mxu0 %v385_v14  ;;  %v173_v49 = vld [vmem:[#allocation6 + $0x78] sm:$0xff] }
  0x42   :  { %387 = vmatprep.subr.bf16.mxu0 %v509_v0  ;;  %v424_v50 = vpack.c.bf16 %v173_v49, %v172_v48  ;;  %v271_v51 = vld [vmem:[%s619_s2] ss:$0 sm:$0xff] }
  0x43   :  { %410 = vmatpush3.bf16.msra.mxu1 %v409_v24  ;;  %v272_v57 = vld [vmem:[%s621_s4] ss:$0 sm:$0xff] }
  0x44   :  { %411 = vmatprep.subr.bf16.mxu1 %v509_v0  ;;  %v273_v62 = vld [vmem:[%s622_s5] ss:$0 sm:$0xff] }
  0x45   :  { %389 = vmatpush3.bf16.msra.mxu0 %v388_v21 }
  0x46   :  { %390 = vmatprep.subr.bf16.mxu0 %v509_v0 }
  0x47   :  { %413 = vmatpush3.bf16.msra.mxu1 %v412_v30 }
  0x48   :  { %414 = vmatprep.subr.bf16.mxu1 %v509_v0 }
  0x49   :  { %392 = vmatpush3.bf16.msra.mxu0 %v391_v27 }
  0x4a   :  { %393 = vmatprep.subr.bf16.mxu0 %v509_v0 }
  0x4b   :  { %416 = vmatpush3.bf16.msra.mxu1 %v415_v36 }
  0x4c   :  { %417 = vmatprep.subr.bf16.mxu1 %v509_v0 }
  0x4d   :  { %395 = vmatpush3.bf16.msra.mxu0 %v394_v33 }
  0x4e   :  { %396 = vmatprep.subr.bf16.mxu0 %v509_v0 }
  0x4f   :  { %419 = vmatpush3.bf16.msra.mxu1 %v418_v42 }
  0x50   :  { %420 = vmatprep.subr.bf16.mxu1 %v509_v0 }
  0x51   :  { %398 = vmatpush3.bf16.msra.mxu0 %v397_v39 }
  0x52   :  { %399 = vmatprep.subr.bf16.mxu0 %v509_v0 }
  0x53   :  { %422 = vmatpush3.bf16.msra.mxu1 %v421_v47 }
  0x54   :  { %423 = vmatprep.subr.bf16.mxu1 %v509_v0 }
  0x55   :  { %401 = vmatpush3.bf16.msra.mxu0 %v400_v43 }
  0x57   :  { %425 = vmatpush3.bf16.msra.mxu1 %v424_v50 }
  0x58   :  { %341 = vmatmul.mubr.f32.vlgmr.msra.gmra.mrb[0].mxu0 %v62_v44 }
 0x12b   :  { %v152_v52 = vpop.f32.mrb[0].mxu0 }
 0x12c   :  { %v153_v53 = vadd.f32 %v271_v51, %v152_v52  ;;  %v342_v54 = vpop.f32.mrb[1].mxu0 }
 0x12e   :  { %v156_v55 = vmul.f32 0.2, %v153_v53 }
 0x130   :  { %v157_v56 = vmax.f32 %v153_v53, %v156_v55 }
 0x132   :  { %376 = vmatmul.mubr.f32.vlgmr.msra.gmra.mrb[0].mxu1 %v157_v56 }
 0x205   :  { %v247_v58 = vpop.f32.mrb[0].mxu1 }
 0x206   :  { %v248_v59 = vadd.f32 %v272_v57, %v247_v58  ;;  %v377_v60 = vpop.f32.mrb[1].mxu1 }
 0x208   :  { %v251_v61 = vmul.f32 0.2, %v248_v59 }
 0x20a   :  { %v252_v63 = vmax.f32 %v248_v59, %v251_v61 }
 0x20c   :  { %v260_v0 = vmul.f32 %v273_v62, %v252_v63 }
 0x20e   :  { %261 = vadd.xlane.f32.xlu0 %v260_v0 }
 0x29b   :  { %v262_v1 = vpop.xlane.xlu0 %261 }
 0x29c   :  { %264 = vst.msk [vmem:[%s623_s6] sm:$0xff] %vm263_vm1, %v262_v1 }
 0x29d   :  { %269 = vsyncpa [#allocation3], 1 }
 0x29e   :  { %270 = vsyncpa [#allocation5], 1 }

</bundles_post_ra>
